<compile_context>
chip_gen: v7x
topology: tpu7x:2x2x1
jax: 0.10.0
libtpu: 0.0.40
codegen_flags: <defaults>
</compile_context>

<pallas_src>
import functools

import jax
import jax.numpy as jnp
from jax.experimental import pallas as pl
from jax.experimental.pallas import tpu as pltpu

LANE = 128  # vreg lane width: pad feature dims of the (static) weights to this


def nn_forward_kernel(x_ref, w1_ref, b1_ref, w2_ref, b2_ref, o_ref):
    # fc: (B, K) @ (K, N_pad) + (1, N_pad)   -- K left unpadded, MXU masks it
    h = jnp.dot(x_ref[...], w1_ref[...], preferred_element_type=jnp.float32)
    # ReLU (VPU)
    h = jnp.maximum(h + b1_ref[...], 0.0)
    # fc2: (B, N_pad) @ (N_pad, N_pad) + (1, N_pad)
    z = jnp.dot(h, w2_ref[...], preferred_element_type=jnp.float32)
    z = z + b2_ref[...]
    # dropout: nn.Dropout() is identity in eval/inference mode.
    # TODO(synk): training-mode dropout (p=0.5) would need pltpu.prng_seed /
    # pltpu.prng_random_bits masking plus 1/(1-p) scaling; not implemented.
    # Softmax over dim 0 (batch axis): per-column, numerically stable.
    m = jnp.max(z, axis=0, keepdims=True)
    e = jnp.exp(z - m)
    s = jnp.sum(e, axis=0, keepdims=True)
    p = e / s  # exact division: softmax columns sum to 1 (approx recip was too lossy)
    # Drop padded (zero-weight) columns inside the kernel: one masked store,
    # no wrapper-side slice op.
    out_cols = o_ref.shape[1]
    o_ref[...] = p[:, :out_cols]


def _round_up(n, m):
    return ((n + m - 1) // m) * m


def prepare_params(w1, b1, w2, b2):
    """One-time padding of the static parameters to 128-lane feature dims.

    Padded hidden/output columns have zero weights and zero biases, so they
    stay exactly zero through fc/ReLU/fc2 and never mix with real columns in
    the per-column softmax(dim=0); the kernel slices them off before storing.
    """
    in_size, out_size = w1.shape
    n_pad = _round_up(out_size, LANE)
    w1_p = jnp.pad(w1, ((0, 0), (0, n_pad - out_size)))            # (in, n_pad)
    b1_p = jnp.pad(b1, ((0, 0), (0, n_pad - out_size)))            # (1, n_pad)
    w2_p = jnp.pad(w2, ((0, n_pad - out_size), (0, n_pad - out_size)))  # (n_pad, n_pad)
    b2_p = jnp.pad(b2, ((0, 0), (0, n_pad - out_size)))            # (1, n_pad)
    return w1_p, b1_p, w2_p, b2_p


@functools.partial(jax.jit, static_argnames=("out_size",))
def nn_forward(x, w1_p, b1_p, w2_p, b2_p, *, out_size):
    B = x.shape[0]
    # Every operand is a single whole block resident in VMEM (grid-less call).
    vmem = pl.BlockSpec(memory_space=pltpu.MemorySpace.VMEM)
    return pl.pallas_call(
        nn_forward_kernel,
        out_shape=jax.ShapeDtypeStruct((B, out_size), jnp.float32),
        in_specs=[vmem, vmem, vmem, vmem, vmem],
        out_specs=vmem,
    )(x, w1_p, b1_p, w2_p, b2_p)


def init_linear_params(key, in_features, out_features):
    # Matches PyTorch nn.Linear default init: U(-1/sqrt(in), 1/sqrt(in)),
    # stored as (in, out) so the kernel can compute x @ W.
    kw, kb = jax.random.split(key)
    bound = 1.0 / jnp.sqrt(jnp.float32(in_features))
    w = jax.random.uniform(kw, (in_features, out_features), jnp.float32,
                           minval=-bound, maxval=bound)
    b = jax.random.uniform(kb, (1, out_features), jnp.float32,
                           minval=-bound, maxval=bound)
    return w, b


def reference_forward(x, w1, b1, w2, b2):
    h = jnp.maximum(x @ w1 + b1, 0.0)
    z = h @ w2 + b2
    return jax.nn.softmax(z, axis=0)


if __name__ == "__main__":
    batch = 8
    input_size = 32
    output_size = 16

    key = jax.random.PRNGKey(0)
    kx, k1, k2 = jax.random.split(key, 3)

    x = jax.random.normal(kx, (batch, input_size), jnp.float32)
    w1, b1 = init_linear_params(k1, input_size, output_size)
    w2, b2 = init_linear_params(k2, output_size, output_size)

    # Pad the static parameters exactly once (not in the per-call path).
    w1_p, b1_p, w2_p, b2_p = prepare_params(w1, b1, w2, b2)
    w1_p, b1_p, w2_p, b2_p = jax.block_until_ready((w1_p, b1_p, w2_p, b2_p))

    out = nn_forward(x, w1_p, b1_p, w2_p, b2_p, out_size=output_size)
    out = jax.block_until_ready(out)

    ref = reference_forward(x, w1, b1, w2, b2)
    assert out.shape == (batch, output_size)
    assert jnp.allclose(out, ref, atol=1e-4, rtol=1e-4), float(
        jnp.max(jnp.abs(out - ref)))

    print("KERNEL_OK")
</pallas_src>

<mosaic_0001>
module attributes {stable_mosaic.version = 11 : i64} {
  func.func @nn_forward_kernel(%arg0: memref<8x32xf32, #tpu.memory_space<vmem>>, %arg1: memref<32x128xf32, #tpu.memory_space<vmem>>, %arg2: memref<1x128xf32, #tpu.memory_space<vmem>>, %arg3: memref<128x128xf32, #tpu.memory_space<vmem>>, %arg4: memref<1x128xf32, #tpu.memory_space<vmem>>, %arg5: memref<8x16xf32, #tpu.memory_space<vmem>>) attributes {dimension_semantics = [], scalar_prefetch = 0 : i64, scratch_operands = 0 : i64, tpu.core_type = #tpu.core_type<tc>} {
    %c0 = arith.constant 0 : index
    %c0_0 = arith.constant 0 : index
    %0 = vector.load %arg0[%c0, %c0_0] : memref<8x32xf32, #tpu.memory_space<vmem>>, vector<8x32xf32>
    %c0_1 = arith.constant 0 : index
    %c0_2 = arith.constant 0 : index
    %1 = vector.load %arg1[%c0_1, %c0_2] : memref<32x128xf32, #tpu.memory_space<vmem>>, vector<32x128xf32>
    %cst = arith.constant dense<0.000000e+00> : vector<8x128xf32>
    %2 = tpu.matmul %0, %1, %cst {dimension_numbers = #tpu.dot_dimension_numbers<[1], [0], [0], [1], [0, 0, 1, 1], [], []>} : vector<8x32xf32>, vector<32x128xf32>, vector<8x128xf32> -> vector<8x128xf32>
    %c0_3 = arith.constant 0 : index
    %c0_4 = arith.constant 0 : index
    %3 = vector.load %arg2[%c0_3, %c0_4] : memref<1x128xf32, #tpu.memory_space<vmem>>, vector<1x128xf32>
    %4 = vector.broadcast %3 : vector<1x128xf32> to vector<8x128xf32>
    %5 = arith.addf %2, %4 : vector<8x128xf32>
    %cst_5 = arith.constant 0.000000e+00 : f32
    %6 = vector.broadcast %cst_5 : f32 to vector<8x128xf32>
    %7 = arith.maximumf %5, %6 : vector<8x128xf32>
    %c0_6 = arith.constant 0 : index
    %c0_7 = arith.constant 0 : index
    %8 = vector.load %arg3[%c0_6, %c0_7] : memref<128x128xf32, #tpu.memory_space<vmem>>, vector<128x128xf32>
    %cst_8 = arith.constant dense<0.000000e+00> : vector<8x128xf32>
    %9 = tpu.matmul %7, %8, %cst_8 {dimension_numbers = #tpu.dot_dimension_numbers<[1], [0], [0], [1], [0, 0, 1, 1], [], []>} : vector<8x128xf32>, vector<128x128xf32>, vector<8x128xf32> -> vector<8x128xf32>
    %c0_9 = arith.constant 0 : index
    %c0_10 = arith.constant 0 : index
    %10 = vector.load %arg4[%c0_9, %c0_10] : memref<1x128xf32, #tpu.memory_space<vmem>>, vector<1x128xf32>
    %11 = vector.broadcast %10 : vector<1x128xf32> to vector<8x128xf32>
    %12 = arith.addf %9, %11 : vector<8x128xf32>
    %cst_11 = arith.constant dense<0xFF800000> : vector<128xf32>
    %13 = vector.multi_reduction <maximumf>, %12, %cst_11 [0] : vector<8x128xf32> to vector<128xf32>
    %14 = vector.shape_cast %13 : vector<128xf32> to vector<1x128xf32>
    %15 = vector.broadcast %14 : vector<1x128xf32> to vector<8x128xf32>
    %16 = arith.subf %12, %15 : vector<8x128xf32>
    %17 = math.exp %16 : vector<8x128xf32>
    %cst_12 = arith.constant dense<0.000000e+00> : vector<128xf32>
    %18 = vector.multi_reduction <add>, %17, %cst_12 [0] : vector<8x128xf32> to vector<128xf32>
    %19 = vector.shape_cast %18 : vector<128xf32> to vector<1x128xf32>
    %20 = vector.broadcast %19 : vector<1x128xf32> to vector<8x128xf32>
    %21 = arith.divf %17, %20 : vector<8x128xf32>
    %22 = vector.extract_strided_slice %21 {offsets = [0, 0], sizes = [8, 16], strides = [1, 1]} : vector<8x128xf32> to vector<8x16xf32>
    %c0_13 = arith.constant 0 : index
    %c0_14 = arith.constant 0 : index
    %23 = vector.load %arg5[%c0_13, %c0_14] : memref<8x16xf32, #tpu.memory_space<vmem>>, vector<8x16xf32>
    tpu.vector_store %arg5[%c0_13, %c0_14], %22 {strides = array<i32>} : memref<8x16xf32, #tpu.memory_space<vmem>>, vector<8x16xf32>,
    return
  }
}

</mosaic_0001>

<bundles_post_ra>
// kernel: nn_forward.1
= control target key start
LH: loop header
LB: loop body
LE: loop exit
PB: predicated region body
PF: predicated region fallthrough
CT: control target
= control target key end

     0   :  { %10 = vsyncpa [#allocation3], 0  ;;  %s582_s0 = inlined_call_operand.hbm [shape: f32[8,32], index: 0, kind: input, shape index: {}]   ;;  %s583_s1 = inlined_call_operand.hbm [shape: f32[32,128], index: 1, kind: input, shape index: {}]   ;;  %s584_s2 = inlined_call_operand.vmem [shape: f32[1,128], index: 2, kind: input, shape index: {}]   ;;  %s585_s3 = inlined_call_operand.hbm [shape: f32[128,128], index: 3, kind: input, shape index: {}]   ;;  %s586_s4 = inlined_call_operand.vmem [shape: f32[1,128], index: 4, kind: input, shape index: {}]   ;;  %s587_s5 = inlined_call_operand.hbm [shape: f32[8,16], index: 5, kind: output, shape index: {}]  }
   0x1   :  { %11 = vsyncpa [#allocation6], 0 }
   0x2   :  { %12 = vsyncpa [#allocation4], 0  ;;  %s483_s18 = smov [#allocation5]   ;;  %s389_s22 = scalar_lea.hbm %s583_s1, 512 }
   0x3   :  { %s28_s19 = sshll.u32 %s483_s18, 4  ;;  %p390_p0 = scmp.ne.s32.totalorder %s583_s1, %s389_s22  ;;  %s29_s19 = int_to_ptr.vmem [resolvable:$true] %s28_s19 }
   0x4   :  { %p393_p1 = scmp.lt.u32.totalorder %s389_s22, %s583_s1 }
   0x6   :  { %p395_p2 = pnand %p393_p1, %p390_p0 }
   0x8   :  { %398 = shalt.err (!%p395_p2)
}
   0x9   :  { %s399_s27 = scalar_lea.vmem %s29_s19, 512  ;;  %p404_p4 = scmp.lt.s32.totalorder %s29_s19, %s29_s19 }
   0xa   :  { %p400_p3 = scmp.ne.s32.totalorder %s29_s19, %s399_s27  ;;  %p405_p5 = scmp.lt.s32.totalorder %s399_s27, %s399_s27 }
   0xc   :  { %p406_p6 = por %p405_p5, %p404_p4 }
   0xe   :  { %p407_p7 = pnand %p406_p6, %p400_p3 }
  0x10   :  { %410 = shalt.err (!%p407_p7)
}
  0x11   :  { %s484_s28 = smov 128   ;;  %s485_s29 = smov 8  }
  0x12   :  { %34 = dma.hbm_to_vmem [thread:$0]  %s583_s1, 512, %s29_s19, [#allocation6], %s484_s28, %s484_s28, %s485_s29  }
  0x13   :  { %s486_s7 = smov [#allocation2]   ;;  %s487_s9 = smov [#allocation7]  }
  0x14   :  { %s19_s8 = sshll.u32 %s486_s7, 4  ;;  %s42_s10 = sshll.u32 %s487_s9, 4  ;;  %s20_s8 = int_to_ptr.vmem [resolvable:$true] %s19_s8  ;;  %s43_s10 = int_to_ptr.vmem [resolvable:$true] %s42_s10 }
  0x15   :  { %s411_s13 = scalar_lea.hbm %s582_s0, 128 }
  0x16   :  { %p412_p8 = scmp.ne.s32.totalorder %s582_s0, %s411_s13  ;;  %p415_p9 = scmp.lt.u32.totalorder %s411_s13, %s582_s0 }
  0x18   :  { %p417_p10 = pnand %p415_p9, %p412_p8 }
  0x1a   :  { %420 = shalt.err (!%p417_p10)
}
  0x1b   :  { %s421_s1 = scalar_lea.vmem %s20_s8, 128  ;;  %p426_p12 = scmp.lt.s32.totalorder %s20_s8, %s20_s8 }
  0x1c   :  { %p422_p11 = scmp.ne.s32.totalorder %s20_s8, %s421_s1  ;;  %p427_p13 = scmp.lt.s32.totalorder %s421_s1, %s421_s1 }
  0x1e   :  { %p428_p0 = por %p427_p13, %p426_p12 }
  0x20   :  { %p429_p1 = pnand %p428_p0, %p422_p11 }
  0x22   :  { %432 = shalt.err (!%p429_p1)
}
  0x23   :  { %22 = dma.hbm_to_vmem [thread:$0]  %s582_s0, 128, %s20_s8, [#allocation3]  }
  0x24   :  { %s433_s22 = scalar_lea.hbm %s585_s3, 2048 }
  0x25   :  { %p434_p2 = scmp.ne.s32.totalorder %s585_s3, %s433_s22  ;;  %p437_p3 = scmp.lt.u32.totalorder %s433_s22, %s585_s3 }
  0x27   :  { %p439_p4 = pnand %p437_p3, %p434_p2 }
  0x29   :  { %442 = shalt.err (!%p439_p4)
}
  0x2a   :  { %s443_s27 = scalar_lea.vmem %s43_s10, 2048  ;;  %p448_p6 = scmp.lt.s32.totalorder %s43_s10, %s43_s10 }
  0x2b   :  { %p444_p5 = scmp.ne.s32.totalorder %s43_s10, %s443_s27  ;;  %p449_p7 = scmp.lt.s32.totalorder %s443_s27, %s443_s27 }
  0x2d   :  { %p450_p8 = por %p449_p7, %p448_p6 }
  0x2f   :  { %p451_p9 = pnand %p450_p8, %p444_p5 }
  0x31   :  { %454 = shalt.err (!%p451_p9)
}
  0x32   :  { %48 = dma.hbm_to_vmem [thread:$0]  %s585_s3, 2048, %s43_s10, [#allocation6], %s484_s28, %s484_s28, %s485_s29  }
  0x33   :  { %477 = dma.done.wait [#allocation3], 128  }
  0x34   :  { %478 = vsyncadd [#allocation3], 4294967168 }
  0x35   :  { %479 = dma.done.wait [#allocation6], 2560  }
  0x36   :  { %480 = vsyncadd [#allocation6], 4294964736  ;;  %v488_v0 = vmov 0.0|0.0   ;;  %vm489_vm0 = vmmov 0   ;;  %v490_v1 = vmov 0.0   ;;  %v61_v2 = vld [vmem:[#allocation5] sm:$0xff] }
  0x37   :  { %346 = vmatprep.subr.bf16.mxu0 %v488_v0  ;;  %308 = vmatprep.mubr.msk.f32.mxu0 %vm489_vm0, %v490_v1  ;;  %v62_v3 = vld [vmem:[#allocation5 + $0x8] sm:$0xff]  ;;  %v63_v4 = vld [vmem:[#allocation5 + $0x10] sm:$0xff]  ;;  %v64_v6 = vld [vmem:[#allocation5 + $0x18] sm:$0xff]  ;;  %vm72_vm1 = vcmask 261120   ;;  %vm257_vm2 = vcmask 130048  }
  0x38   :  { %352 = vmatprep.subr.bf16.mxu1 %v488_v0  ;;  %343 = vmatprep.mubr.msk.f32.mxu1 %vm489_vm0, %v490_v1  ;;  %v347_v5 = vpack.c.bf16 %v62_v3, %v61_v2  ;;  %v147_v7 = vld [vmem:[#allocation7] sm:$0xff]  ;;  %v148_v8 = vld [vmem:[#allocation7 + $0x8] sm:$0xff]  ;;  %v149_v9 = vld [vmem:[#allocation7 + $0x10] sm:$0xff]  ;;  %v350_v11 = vpack.c.bf16 %v64_v6, %v63_v4 }
  0x39   :  { %v150_v10 = vld [vmem:[#allocation7 + $0x18] sm:$0xff]  ;;  %v353_v12 = vpack.c.bf16 %v148_v8, %v147_v7  ;;  %v151_v14 = vld [vmem:[#allocation7 + $0x20] sm:$0xff]  ;;  %v152_v15 = vld [vmem:[#allocation7 + $0x28] sm:$0xff] }
  0x3a   :  { %348 = vmatpush3.bf16.msra.mxu0 %v347_v5  ;;  %v356_v13 = vpack.c.bf16 %v150_v10, %v149_v9  ;;  %v60_v16 = vld [vmem:[#allocation2] sm:$0xff]  ;;  %v359_v17 = vpack.c.bf16 %v152_v15, %v151_v14  ;;  %v153_v18 = vld [vmem:[#allocation7 + $0x30] sm:$0xff]  ;;  %v155_v21 = vld [vmem:[#allocation7 + $0x40] sm:$0xff] }
  0x3b   :  { %349 = vmatprep.subr.bf16.mxu0 %v488_v0  ;;  %354 = vmatpush3.bf16.msra.mxu1 %v353_v12  ;;  %v154_v19 = vld [vmem:[#allocation7 + $0x38] sm:$0xff]  ;;  %v156_v22 = vld [vmem:[#allocation7 + $0x48] sm:$0xff]  ;;  %v157_v24 = vld [vmem:[#allocation7 + $0x50] sm:$0xff] }
  0x3c   :  { %355 = vmatprep.subr.bf16.mxu1 %v488_v0  ;;  %v362_v20 = vpack.c.bf16 %v154_v19, %v153_v18  ;;  %v365_v23 = vpack.c.bf16 %v156_v22, %v155_v21  ;;  %v158_v25 = vld [vmem:[#allocation7 + $0x58] sm:$0xff]  ;;  %v159_v27 = vld [vmem:[#allocation7 + $0x60] sm:$0xff]  ;;  %v160_v28 = vld [vmem:[#allocation7 + $0x68] sm:$0xff] }
  0x3d   :  { %v368_v26 = vpack.c.bf16 %v158_v25, %v157_v24  ;;  %v371_v29 = vpack.c.bf16 %v160_v28, %v159_v27  ;;  %v161_v30 = vld [vmem:[#allocation7 + $0x70] sm:$0xff]  ;;  %v162_v31 = vld [vmem:[#allocation7 + $0x78] sm:$0xff] }
  0x3e   :  { %351 = vmatpush3.bf16.msra.mxu0 %v350_v11  ;;  %v374_v32 = vpack.c.bf16 %v162_v31, %v161_v30  ;;  %v275_v33 = vld [vmem:[%s584_s2] ss:$0 sm:$0xff]  ;;  %s491_s2 = smov [#allocation8]  }
  0x3f   :  { %357 = vmatpush3.bf16.msra.mxu1 %v356_v13  ;;  %v277_v38 = vld [vmem:[%s586_s4] ss:$0 sm:$0xff]  ;;  %s265_s4 = sshll.u32 %s491_s2, 4  ;;  %s266_s4 = int_to_ptr.vmem [resolvable:$true] %s265_s4 }
  0x40   :  { %358 = vmatprep.subr.bf16.mxu1 %v488_v0  ;;  %s455_s7 = scalar_lea.vmem %s266_s4, 128  ;;  %p460_p11 = scmp.lt.s32.totalorder %s266_s4, %s266_s4 }
  0x41   :  { %309 = vmatmul.mubr.msk.f32.vlgmr.msra.gmra.mrb[0].mxu0 %vm72_vm1, %v60_v16  ;;  %p456_p10 = scmp.ne.s32.totalorder %s266_s4, %s455_s7  ;;  %p461_p12 = scmp.lt.s32.totalorder %s455_s7, %s455_s7 }
  0x43   :  { %360 = vmatpush3.bf16.msra.mxu1 %v359_v17  ;;  %p462_p13 = por %p461_p12, %p460_p11 }
  0x44   :  { %361 = vmatprep.subr.bf16.mxu1 %v488_v0 }
  0x45   :  { %p463_p0 = pnand %p462_p13, %p456_p10 }
  0x47   :  { %363 = vmatpush3.bf16.msra.mxu1 %v362_v20 }
  0x48   :  { %364 = vmatprep.subr.bf16.mxu1 %v488_v0 }
  0x4b   :  { %366 = vmatpush3.bf16.msra.mxu1 %v365_v23 }
  0x4c   :  { %367 = vmatprep.subr.bf16.mxu1 %v488_v0 }
  0x4f   :  { %369 = vmatpush3.bf16.msra.mxu1 %v368_v26 }
  0x50   :  { %370 = vmatprep.subr.bf16.mxu1 %v488_v0 }
  0x53   :  { %372 = vmatpush3.bf16.msra.mxu1 %v371_v29 }
  0x54   :  { %373 = vmatprep.subr.bf16.mxu1 %v488_v0 }
  0x57   :  { %375 = vmatpush3.bf16.msra.mxu1 %v374_v32 }
 0x114   :  { %v142_v34 = vpop.f32.mrb[0].mxu0 }
 0x115   :  { %v143_v35 = vadd.f32 %v275_v33, %v142_v34  ;;  %v310_v36 = vpop.f32.mrb[1].mxu0 }
 0x117   :  { %v146_v37 = vmax.f32 %v143_v35, 0.0 }
 0x119   :  { %344 = vmatmul.mubr.f32.vlgmr.msra.gmra.mrb[0].mxu1 %v146_v37 }
 0x1ec   :  { %v236_v39 = vpop.f32.mrb[0].mxu1 }
 0x1ed   :  { %v237_v40 = vadd.f32 %v277_v38, %v236_v39  ;;  %v345_v41 = vpop.f32.mrb[1].mxu1 }
 0x1ef   :  { %v240_v42 = vrot.slane %v237_v40, 4 }
 0x1f1   :  { %v241_v43 = vmax.f32 %v237_v40, %v240_v42 }
 0x1f3   :  { %v242_v44 = vrot.slane %v241_v43, 2 }
 0x1f5   :  { %v243_v45 = vmax.f32 %v241_v43, %v242_v44 }
 0x1f7   :  { %v244_v46 = vrot.slane %v243_v45, 1 }
 0x1f9   :  { %v245_v47 = vmax.f32 %v243_v45, %v244_v46 }
 0x1fb   :  { %v246_v48 = vsub.f32 %v237_v40, %v245_v47 }
 0x1fd   :  { %v247_v49 = vmul.f32 1.442695, %v246_v48 }
 0x1ff   :  { %385 = vpow2.f32 %v247_v49 }
 0x209   :  { %v386_v50 = vpop.eup %385 }
 0x20a   :  { %v249_v51 = vrot.slane %v386_v50, 4 }
 0x20c   :  { %v250_v52 = vadd.f32 %v386_v50, %v249_v51 }
 0x20e   :  { %v251_v53 = vrot.slane %v250_v52, 2 }
 0x210   :  { %v252_v54 = vadd.f32 %v251_v53, %v250_v52 }
 0x212   :  { %v253_v55 = vrot.slane %v252_v54, 1 }
 0x214   :  { %v254_v56 = vadd.f32 %v253_v55, %v252_v54 }
 0x216   :  { %387 = vrcp.f32 %v254_v56 }
 0x220   :  { %v388_v57 = vpop.eup %387 }
 0x221   :  { %v256_v58 = vmul.f32 %v388_v57, %v386_v50 }
 0x223   :  { %258 = vst.msk [vmem:[#allocation8] sm:$0xff] %vm257_vm2, %v256_v58 }
 0x224   :  { %466 = shalt.err (!%p463_p0)
}
 0x225   :  { %s467_s10 = scalar_lea.hbm %s587_s5, 128 }
 0x226   :  { %p468_p1 = scmp.ne.s32.totalorder %s587_s5, %s467_s10  ;;  %p471_p2 = scmp.lt.u32.totalorder %s467_s10, %s587_s5 }
 0x228   :  { %p473_p3 = pnand %p471_p2, %p468_p1 }
 0x22a   :  { %476 = shalt.err (!%p473_p3)
}
 0x22b   :  { %268 = dma.vmem_to_hbm [thread:$0]  %s266_s4, 128, %s587_s5, [#allocation4]  }
 0x22c   :  { %481 = dma.done.wait [#allocation4], 128  }
 0x22d   :  { %482 = vsyncadd [#allocation4], 4294967168 }
 0x22e   :  { %272 = vsyncpa [#allocation3], 1 }
 0x22f   :  { %273 = vsyncpa [#allocation6], 1 }
 0x230   :  { %274 = vsyncpa [#allocation4], 1 }

</bundles_post_ra>
